<compile_context>
chip_gen: v7x
topology: tpu7x:2x2x1
jax: 0.10.0
libtpu: 0.0.40
codegen_flags: <defaults>
</compile_context>

<pallas_src>
import functools

import jax
import jax.numpy as jnp
from jax.experimental import pallas as pl
from jax.experimental.pallas import tpu as pltpu


def _round_up(n, m):
    return ((n + m - 1) // m) * m


def crossnet_mix_kernel(x_ref, w1_ref, cbd_ref, ut_ref, exp_ref, b_ref, o_ref, xl_ref,
                        *, er, approx_recip):
    """One (batch-tile, layer) grid step of CrossNetMix with all experts fused.

    x_ref  : (TB, Dp)          f32 input tile (resident across the layer axis)
    w1_ref : (1, Dp, E*R + E)  this layer's [V_stack | gating^T]    (compute dtype)
    cbd_ref: (1, E*R, E*R)     this layer's block-diagonal C^T      (compute dtype)
    ut_ref : (1, E*R, Dp)      this layer's stacked U^T             (compute dtype)
    exp_ref: (E, 2*E*R)        [per-expert one-hot expander | ones] (compute dtype)
    b_ref  : (1, 1, Dp)        this layer's bias (f32)
    o_ref  : (TB, Dp)          output tile (written at the last layer)
    xl_ref : (TB, Dp)          f32 scratch carrying x_l across layers
    """
    l = pl.program_id(1)
    cdt = w1_ref.dtype

    @pl.when(l == 0)
    def _init():
        xl_ref[...] = x_ref[...]

    # All expert V-projections + gating logits in ONE lane-dense matmul.
    proj = jnp.dot(xl_ref[...].astype(cdt), w1_ref[0],
                   preferred_element_type=jnp.float32)              # (TB, E*R + E)
    hidden = proj[:, :er]                                           # (TB, E*R)
    scores = proj[:, er:]                                           # (TB, E)

    # Softmax gate expanded to E*R lanes: exp on VPU/EUP; the narrow per-expert
    # normalization is a tiny matmul (idle MXU) + EUP reciprocal instead of a
    # masked sub-128-lane cross-lane sum/divide.
    ew = jnp.exp(scores - jnp.max(scores, axis=-1, keepdims=True))  # (TB, E)
    ge = jnp.dot(ew.astype(cdt), exp_ref[...],
                 preferred_element_type=jnp.float32)                # (TB, 2*E*R)
    gate = ge[:, :er] * pl.reciprocal(ge[:, er:], approx=approx_recip)

    # tanh -> block-diagonal C -> tanh, for all experts at once.
    # NOTE: for E*R beyond a couple of MXU N-tiles (>=512) the block-diagonal
    # matmul wastes (E-1)/E of its MACs; restructure per-expert in that regime.
    h = jnp.tanh(hidden)
    h = jnp.dot(h.astype(cdt), cbd_ref[0], preferred_element_type=jnp.float32)
    h = jnp.tanh(h)

    # Gate BEFORE the stacked-U matmul:  sum_e w_e (h_e @ U_e^T) == (gate*h) @ U_stack^T
    uv = jnp.dot((h * gate).astype(cdt), ut_ref[0],
                 preferred_element_type=jnp.float32)                # (TB, Dp)

    # Bias enters once (softmax weights sum to 1). x0 is read at its use sites
    # (short live range; vld slots have slack).
    x0 = x_ref[...]
    new_xl = x0 * (uv + b_ref[0]) + xl_ref[...] + x0
    xl_ref[...] = new_xl

    @pl.when(l == pl.num_programs(1) - 1)
    def _finalize():
        o_ref[...] = new_xl.astype(o_ref.dtype)


def pack_crossnet_mix_params(U, V, C, G, bias, *, compute_dtype=jnp.bfloat16):
    """One-time lane-dense repack of CrossNetMix parameters (do this at model init).

    U, V: (L, E, D, R)   C: (L, E, R, R)   G: (E, D)   bias: (L, D)
    Returns (W1, Cbd, Ut, ExpPair, Bias) with the feature dim padded to 128.
    """
    L, E, D, R = U.shape
    ER = E * R
    Dp = _round_up(D, 128)

    # [V_stack | gating^T]: one matmul yields every expert's projection + gate logits.
    # NOTE(v5e): when ER % 128 == 0 the E folded gate columns cost one extra
    # 128-wide MXU N pass on v5e only; unfold them there only if bundles show MXU-bound.
    Vs = jnp.transpose(V, (0, 2, 1, 3)).reshape(L, D, ER)
    Gt = jnp.broadcast_to(jnp.transpose(G, (1, 0))[None], (L, D, E))
    W1 = jnp.concatenate([Vs, Gt], axis=-1)                         # (L, D, ER+E)
    W1 = jnp.pad(W1, ((0, 0), (0, Dp - D), (0, 0)))

    # Block-diagonal C^T (block e = C[l,e]^T), built with a single einsum.
    Ct = jnp.transpose(C, (0, 1, 3, 2))                             # (L, E, R, R)
    Cbd = jnp.einsum('ef,lers->lerfs', jnp.eye(E, dtype=C.dtype), Ct)
    Cbd = Cbd.reshape(L, ER, ER)

    # Stacked U^T.
    Ut = jnp.transpose(U, (0, 1, 3, 2)).reshape(L, ER, D)
    Ut = jnp.pad(Ut, ((0, 0), (0, 0), (0, Dp - D)))

    # Gate expander: ew @ [one-hot-per-expert | ones] = [numerator | denominator].
    Exp = jnp.kron(jnp.eye(E, dtype=jnp.float32), jnp.ones((1, R), jnp.float32))
    ExpPair = jnp.concatenate([Exp, jnp.ones((E, ER), jnp.float32)], axis=-1)

    Bias = jnp.pad(bias.astype(jnp.float32), ((0, 0), (0, Dp - D)))
    Bias = Bias.reshape(L, 1, Dp)                                   # lane/sublane-clean block

    return (W1.astype(compute_dtype), Cbd.astype(compute_dtype),
            Ut.astype(compute_dtype), ExpPair.astype(compute_dtype), Bias)


def crossnet_mix_packed(x, packed, *, block_b=None, approx_recip=True):
    """x: (B, D); packed = pack_crossnet_mix_params(...). Returns (B, D)."""
    W1, Cbd, Ut, ExpPair, Bias = packed
    B, D = x.shape
    L, Dp, ERE = W1.shape
    E = ExpPair.shape[0]
    ER = ExpPair.shape[1] // 2
    compute_dtype = W1.dtype
    assert ERE == ER + E and Dp >= D and Ut.shape == (L, ER, Dp)

    if block_b is None:
        # Large tiles fill the MXU M dim and amortize per-step overhead; keep
        # >= 4 batch tiles (>= 2 per TensorCore on v7x) when the batch allows,
        # and a multiple of 16 rows when the MXU operands are bf16.
        mult = 16 if jnp.dtype(compute_dtype).itemsize < 4 else 8
        if B >= 4 * 128:
            block_b = min(512, _round_up(B // 4, mult))
        else:
            block_b = _round_up(max(B, mult), mult)
    block_b = _round_up(block_b, 8)
    Bp = _round_up(B, block_b)

    x_pad = jnp.pad(x.astype(jnp.float32), ((0, Bp - B), (0, Dp - D)))

    # VMEM budget: 2x one streamed layer's weights (double-buffered) + x/out tiles
    # (double-buffered) + the f32 x_l carry scratch + the tiny gate expander.
    # Pass an explicit limit so big configs aren't rejected by the default scoped
    # limit (32 MiB on v6e/v7x) while staying modest for v7x's 64 MiB physical VMEM.
    itemw = jnp.dtype(compute_dtype).itemsize
    per_layer_w = (Dp * ERE + ER * ER + ER * Dp) * itemw + Dp * 4
    resident = 2 * per_layer_w + 5 * block_b * Dp * 4 + E * 2 * ER * itemw
    vmem_limit = int(min(max(2 * resident, 32 << 20), 112 << 20))

    kernel = functools.partial(crossnet_mix_kernel, er=ER, approx_recip=approx_recip)

    out = pl.pallas_call(
        kernel,
        out_shape=jax.ShapeDtypeStruct((Bp, Dp), jnp.float32),
        grid=(Bp // block_b, L),
        in_specs=[
            # x tile: same block index for every layer -> resident across the layer axis.
            pl.BlockSpec((block_b, Dp), lambda i, l: (i, 0)),
            # Per-layer weight slabs: streamed along the trailing "arbitrary" axis,
            # double-buffered so the next layer's DMA overlaps this layer's compute.
            pl.BlockSpec((1, Dp, ERE), lambda i, l: (l, 0, 0)),
            pl.BlockSpec((1, ER, ER), lambda i, l: (l, 0, 0)),
            pl.BlockSpec((1, ER, Dp), lambda i, l: (l, 0, 0)),
            pl.BlockSpec((E, 2 * ER), lambda i, l: (0, 0)),      # tiny constant
            pl.BlockSpec((1, 1, Dp), lambda i, l: (l, 0, 0)),
        ],
        out_specs=pl.BlockSpec((block_b, Dp), lambda i, l: (i, 0)),
        scratch_shapes=[pltpu.VMEM((block_b, Dp), jnp.float32)],
        compiler_params=pltpu.CompilerParams(
            dimension_semantics=("parallel", "arbitrary"),
            vmem_limit_bytes=vmem_limit),
    )(x_pad, W1, Cbd, Ut, ExpPair, Bias)

    return out[:B, :D]


def crossnet_mix(x, U, V, C, G, bias, *, compute_dtype=jnp.bfloat16,
                 block_b=None, approx_recip=True):
    """Convenience one-shot wrapper (prefer packing once + crossnet_mix_packed)."""
    packed = pack_crossnet_mix_params(U, V, C, G, bias, compute_dtype=compute_dtype)
    return crossnet_mix_packed(x, packed, block_b=block_b, approx_recip=approx_recip)


def crossnet_mix_reference(x, U, V, C, G, bias):
    """Pure-JAX mirror of the PyTorch forward (column-vector form)."""
    L, E = U.shape[0], U.shape[1]
    x0 = x[:, :, None]                                              # (B, D, 1)
    xl = x0
    for l in range(L):
        outs, scores = [], []
        for e in range(E):
            scores.append(xl[:, :, 0] @ G[e][:, None])              # (B, 1)
            vx = jnp.einsum('dr,bdo->bro', V[l, e], xl)             # V^T @ x_l
            vx = jnp.tanh(vx)
            vx = jnp.einsum('rk,bko->bro', C[l, e], vx)             # C @ .
            vx = jnp.tanh(vx)
            uv = jnp.einsum('dr,bro->bdo', U[l, e], vx)             # U @ .
            outs.append((x0 * (uv + bias[l][None, :, None]))[:, :, 0])
        outs = jnp.stack(outs, 2)                                   # (B, D, E)
        sc = jnp.stack(scores, 1)                                   # (B, E, 1)
        w = jax.nn.softmax(sc, axis=1)
        moe = jnp.matmul(outs, w)                                   # (B, D, 1)
        xl = moe + xl + x0                                          # x_l = moe+x_l; x_l = x_l+x_0
    return xl[:, :, 0]                                              # == squeeze()


if __name__ == "__main__":
    # Module defaults: layer_num=2, low_rank=32, num_experts=4; small demo shapes.
    B, D, R, E, L = 32, 64, 32, 4, 2
    key = jax.random.PRNGKey(0)
    kx, ku, kv, kc, kg = jax.random.split(key, 5)

    # Deterministic xavier-normal-style init (synthetic weights, no checkpoint).
    std_uv = (2.0 / (D + R)) ** 0.5
    std_c = (2.0 / (R + R)) ** 0.5
    std_g = (2.0 / (D + 1)) ** 0.5

    x = jax.random.normal(kx, (B, D), dtype=jnp.float32)
    U = std_uv * jax.random.normal(ku, (L, E, D, R), dtype=jnp.float32)
    V = std_uv * jax.random.normal(kv, (L, E, D, R), dtype=jnp.float32)
    C = std_c * jax.random.normal(kc, (L, E, R, R), dtype=jnp.float32)
    G = std_g * jax.random.normal(kg, (E, D), dtype=jnp.float32)    # gating Linear(D,1) weights
    bias = jnp.zeros((L, D), dtype=jnp.float32)                     # nn.init.zeros_

    ref = crossnet_mix_reference(x, U, V, C, G, bias)

    # Pack weights ONCE (per-call transpose/concat/pad removed per perf review).
    packed_f32 = pack_crossnet_mix_params(U, V, C, G, bias, compute_dtype=jnp.float32)

    # (a) f32 operands + exact reciprocal, multi-tile batch grid (grid=(4, L)):
    #     tight check of the streamed-layer / carried-x_l structure. Real batches
    #     use the default 128-512-row tiles; tiny tiles here are demo-only.
    out = jax.block_until_ready(
        crossnet_mix_packed(x, packed_f32, block_b=8, approx_recip=False))
    assert out.shape == (B, D)
    err = float(jnp.max(jnp.abs(out - ref)))
    assert jnp.allclose(out, ref, atol=1e-4, rtol=1e-4), err

    # (b) f32 operands with the fast EUP reciprocal for the gate (perf default).
    out_fast = jax.block_until_ready(crossnet_mix_packed(x, packed_f32))
    err_fast = float(jnp.max(jnp.abs(out_fast - ref)))
    assert err_fast < 5e-2, err_fast

    # (c) bf16 MXU operands (library default; main lever on v5e, ~2x peak v6e/v7x).
    #     Loose tolerance: the tanh(V^T x) chain amplifies bf16 rounding slightly.
    out_bf16 = jax.block_until_ready(crossnet_mix(x, U, V, C, G, bias))
    err_bf16 = float(jnp.max(jnp.abs(out_bf16 - ref)))
    assert err_bf16 < 0.5, err_bf16

    print("KERNEL_OK")
</pallas_src>

<mosaic_0001>
module attributes {stable_mosaic.version = 11 : i64} {
  func.func @crossnet_mix_kernel(%arg0: i32, %arg1: i32, %arg2: memref<8x128xf32, #tpu.memory_space<vmem>>, %arg3: memref<1x128x132xf32, #tpu.memory_space<vmem>>, %arg4: memref<1x128x128xf32, #tpu.memory_space<vmem>>, %arg5: memref<1x128x128xf32, #tpu.memory_space<vmem>>, %arg6: memref<4x256xf32, #tpu.memory_space<vmem>>, %arg7: memref<1x1x128xf32, #tpu.memory_space<vmem>>, %arg8: memref<8x128xf32, #tpu.memory_space<vmem>>, %arg9: memref<8x128xf32, #tpu.memory_space<vmem>>) attributes {dimension_semantics = [#tpu.dimension_semantics<parallel>, #tpu.dimension_semantics<arbitrary>], iteration_bounds = array<i64: 4, 2>, scalar_prefetch = 0 : i64, scratch_operands = 1 : i64, tpu.core_type = #tpu.core_type<tc>, window_params = [{transform_indices = @transform_0, window_bounds = array<i64: 8, 128>}, {transform_indices = @transform_1, window_bounds = array<i64: 1, 128, 132>}, {transform_indices = @transform_2, window_bounds = array<i64: 1, 128, 128>}, {transform_indices = @transform_3, window_bounds = array<i64: 1, 128, 128>}, {pipeline_mode = #tpu.pipeline_mode<synchronous>, transform_indices = @transform_4, window_bounds = array<i64: 4, 256>}, {transform_indices = @transform_5, window_bounds = array<i64: 1, 1, 128>}, {transform_indices = @transform_6, window_bounds = array<i64: 8, 128>}]} {
    %c0_i32 = arith.constant 0 : i32
    %0 = arith.cmpi eq, %arg1, %c0_i32 : i32
    %1 = arith.extui %0 : i1 to i32
    %c0_i32_0 = arith.constant 0 : i32
    %2 = arith.cmpi ne, %1, %c0_i32_0 : i32
    scf.if %2 {
      %c0_27 = arith.constant 0 : index
      %c0_28 = arith.constant 0 : index
      %42 = vector.load %arg2[%c0_27, %c0_28] : memref<8x128xf32, #tpu.memory_space<vmem>>, vector<8x128xf32>
      %c0_29 = arith.constant 0 : index
      %c0_30 = arith.constant 0 : index
      %43 = vector.load %arg9[%c0_29, %c0_30] : memref<8x128xf32, #tpu.memory_space<vmem>>, vector<8x128xf32>
      tpu.vector_store %arg9[%c0_29, %c0_30], %42 {strides = array<i32>} : memref<8x128xf32, #tpu.memory_space<vmem>>, vector<8x128xf32>,
    } else {
    }
    %c0 = arith.constant 0 : index
    %c0_1 = arith.constant 0 : index
    %3 = vector.load %arg9[%c0, %c0_1] : memref<8x128xf32, #tpu.memory_space<vmem>>, vector<8x128xf32>
    %c0_2 = arith.constant 0 : index
    %c0_3 = arith.constant 0 : index
    %c0_4 = arith.constant 0 : index
    %4 = vector.load %arg3[%c0_2, %c0_3, %c0_4] : memref<1x128x132xf32, #tpu.memory_space<vmem>>, vector<1x128x132xf32>
    %5 = vector.shape_cast %4 : vector<1x128x132xf32> to vector<128x132xf32>
    %cst = arith.constant dense<0.000000e+00> : vector<8x132xf32>
    %6 = tpu.matmul %3, %5, %cst {dimension_numbers = #tpu.dot_dimension_numbers<[1], [0], [0], [1], [0, 0, 1, 1], [], []>} : vector<8x128xf32>, vector<128x132xf32>, vector<8x132xf32> -> vector<8x132xf32>
    %7 = vector.extract_strided_slice %6 {offsets = [0, 0], sizes = [8, 128], strides = [1, 1]} : vector<8x132xf32> to vector<8x128xf32>
    %8 = vector.extract_strided_slice %6 {offsets = [0, 128], sizes = [8, 4], strides = [1, 1]} : vector<8x132xf32> to vector<8x4xf32>
    %cst_5 = arith.constant dense<0xFF800000> : vector<8xf32>
    %9 = vector.multi_reduction <maximumf>, %8, %cst_5 [1] : vector<8x4xf32> to vector<8xf32>
    %10 = vector.shape_cast %9 : vector<8xf32> to vector<8x1xf32>
    %11 = vector.broadcast %10 : vector<8x1xf32> to vector<8x4xf32>
    %12 = arith.subf %8, %11 : vector<8x4xf32>
    %13 = math.exp %12 : vector<8x4xf32>
    %c0_6 = arith.constant 0 : index
    %c0_7 = arith.constant 0 : index
    %14 = vector.load %arg6[%c0_6, %c0_7] : memref<4x256xf32, #tpu.memory_space<vmem>>, vector<4x256xf32>
    %cst_8 = arith.constant dense<0.000000e+00> : vector<8x256xf32>
    %15 = tpu.matmul %13, %14, %cst_8 {dimension_numbers = #tpu.dot_dimension_numbers<[1], [0], [0], [1], [0, 0, 1, 1], [], []>} : vector<8x4xf32>, vector<4x256xf32>, vector<8x256xf32> -> vector<8x256xf32>
    %16 = vector.extract_strided_slice %15 {offsets = [0, 0], sizes = [8, 128], strides = [1, 1]} : vector<8x256xf32> to vector<8x128xf32>
    %17 = vector.extract_strided_slice %15 {offsets = [0, 128], sizes = [8, 128], strides = [1, 1]} : vector<8x256xf32> to vector<8x128xf32>
    %18 = tpu.reciprocal %17 : vector<8x128xf32> -> vector<8x128xf32>
    %19 = arith.mulf %16, %18 : vector<8x128xf32>
    %20 = math.tanh %7 : vector<8x128xf32>
    %c0_9 = arith.constant 0 : index
    %c0_10 = arith.constant 0 : index
    %c0_11 = arith.constant 0 : index
    %21 = vector.load %arg4[%c0_9, %c0_10, %c0_11] : memref<1x128x128xf32, #tpu.memory_space<vmem>>, vector<1x128x128xf32>
    %22 = vector.shape_cast %21 : vector<1x128x128xf32> to vector<128x128xf32>
    %cst_12 = arith.constant dense<0.000000e+00> : vector<8x128xf32>
    %23 = tpu.matmul %20, %22, %cst_12 {dimension_numbers = #tpu.dot_dimension_numbers<[1], [0], [0], [1], [0, 0, 1, 1], [], []>} : vector<8x128xf32>, vector<128x128xf32>, vector<8x128xf32> -> vector<8x128xf32>
    %24 = math.tanh %23 : vector<8x128xf32>
    %25 = arith.mulf %24, %19 : vector<8x128xf32>
    %c0_13 = arith.constant 0 : index
    %c0_14 = arith.constant 0 : index
    %c0_15 = arith.constant 0 : index
    %26 = vector.load %arg5[%c0_13, %c0_14, %c0_15] : memref<1x128x128xf32, #tpu.memory_space<vmem>>, vector<1x128x128xf32>
    %27 = vector.shape_cast %26 : vector<1x128x128xf32> to vector<128x128xf32>
    %cst_16 = arith.constant dense<0.000000e+00> : vector<8x128xf32>
    %28 = tpu.matmul %25, %27, %cst_16 {dimension_numbers = #tpu.dot_dimension_numbers<[1], [0], [0], [1], [0, 0, 1, 1], [], []>} : vector<8x128xf32>, vector<128x128xf32>, vector<8x128xf32> -> vector<8x128xf32>
    %c0_17 = arith.constant 0 : index
    %c0_18 = arith.constant 0 : index
    %29 = vector.load %arg2[%c0_17, %c0_18] : memref<8x128xf32, #tpu.memory_space<vmem>>, vector<8x128xf32>
    %c0_19 = arith.constant 0 : index
    %c0_20 = arith.constant 0 : index
    %c0_21 = arith.constant 0 : index
    %30 = vector.load %arg7[%c0_19, %c0_20, %c0_21] : memref<1x1x128xf32, #tpu.memory_space<vmem>>, vector<1x1x128xf32>
    %31 = vector.shape_cast %30 : vector<1x1x128xf32> to vector<1x128xf32>
    %32 = vector.broadcast %31 : vector<1x128xf32> to vector<8x128xf32>
    %33 = arith.addf %28, %32 : vector<8x128xf32>
    %34 = arith.mulf %29, %33 : vector<8x128xf32>
    %c0_22 = arith.constant 0 : index
    %c0_23 = arith.constant 0 : index
    %35 = vector.load %arg9[%c0_22, %c0_23] : memref<8x128xf32, #tpu.memory_space<vmem>>, vector<8x128xf32>
    %36 = arith.addf %34, %35 : vector<8x128xf32>
    %37 = arith.addf %36, %29 : vector<8x128xf32>
    %c0_24 = arith.constant 0 : index
    %c0_25 = arith.constant 0 : index
    %38 = vector.load %arg9[%c0_24, %c0_25] : memref<8x128xf32, #tpu.memory_space<vmem>>, vector<8x128xf32>
    tpu.vector_store %arg9[%c0_24, %c0_25], %37 {strides = array<i32>} : memref<8x128xf32, #tpu.memory_space<vmem>>, vector<8x128xf32>,
    %c1_i32 = arith.constant 1 : i32
    %39 = arith.cmpi eq, %arg1, %c1_i32 : i32
    %40 = arith.extui %39 : i1 to i32
    %c0_i32_26 = arith.constant 0 : i32
    %41 = arith.cmpi ne, %40, %c0_i32_26 : i32
    scf.if %41 {
      %c0_27 = arith.constant 0 : index
      %c0_28 = arith.constant 0 : index
      %42 = vector.load %arg8[%c0_27, %c0_28] : memref<8x128xf32, #tpu.memory_space<vmem>>, vector<8x128xf32>
      tpu.vector_store %arg8[%c0_27, %c0_28], %37 {strides = array<i32>} : memref<8x128xf32, #tpu.memory_space<vmem>>, vector<8x128xf32>,
    } else {
    }
    return
  }
  func.func @transform_0(%arg0: i32, %arg1: i32) -> (i32, i32) {
    %c0_i32 = arith.constant 0 : i32
    %c0_i32_0 = arith.constant 0 : i32
    return %arg0, %c0_i32 : i32, i32
  }
  func.func @transform_1(%arg0: i32, %arg1: i32) -> (i32, i32, i32) {
    %c0_i32 = arith.constant 0 : i32
    %c0_i32_0 = arith.constant 0 : i32
    %c0_i32_1 = arith.constant 0 : i32
    return %arg1, %c0_i32, %c0_i32_0 : i32, i32, i32
  }
  func.func @transform_2(%arg0: i32, %arg1: i32) -> (i32, i32, i32) {
    %c0_i32 = arith.constant 0 : i32
    %c0_i32_0 = arith.constant 0 : i32
    %c0_i32_1 = arith.constant 0 : i32
    return %arg1, %c0_i32, %c0_i32_0 : i32, i32, i32
  }
  func.func @transform_3(%arg0: i32, %arg1: i32) -> (i32, i32, i32) {
    %c0_i32 = arith.constant 0 : i32
    %c0_i32_0 = arith.constant 0 : i32
    %c0_i32_1 = arith.constant 0 : i32
    return %arg1, %c0_i32, %c0_i32_0 : i32, i32, i32
  }
  func.func @transform_4(%arg0: i32, %arg1: i32) -> (i32, i32) {
    %c0_i32 = arith.constant 0 : i32
    %c0_i32_0 = arith.constant 0 : i32
    %c0_i32_1 = arith.constant 0 : i32
    return %c0_i32, %c0_i32_0 : i32, i32
  }
  func.func @transform_5(%arg0: i32, %arg1: i32) -> (i32, i32, i32) {
    %c0_i32 = arith.constant 0 : i32
    %c0_i32_0 = arith.constant 0 : i32
    %c0_i32_1 = arith.constant 0 : i32
    return %arg1, %c0_i32, %c0_i32_0 : i32, i32, i32
  }
  func.func @transform_6(%arg0: i32, %arg1: i32) -> (i32, i32) {
    %c0_i32 = arith.constant 0 : i32
    %c0_i32_0 = arith.constant 0 : i32
    return %arg0, %c0_i32 : i32, i32
  }
}

</mosaic_0001>

<bundles_post_ra>
// kernel: tpu_custom_call.1
= control target key start
LH: loop header
LB: loop body
LE: loop exit
PB: predicated region body
PF: predicated region fallthrough
CT: control target
= control target key end

     0   :  { %s1549_s0 = inlined_call_operand.vmem [shape: f32[32,128], index: 0, kind: input, shape index: {}]   ;;  %s1550_s1 = inlined_call_operand.vmem [shape: f32[2,128,132], index: 1, kind: input, shape index: {}]   ;;  %s1551_s2 = inlined_call_operand.vmem [shape: f32[2,128,128], index: 2, kind: input, shape index: {}]   ;;  %s1552_s3 = inlined_call_operand.vmem [shape: f32[2,128,128], index: 3, kind: input, shape index: {}]   ;;  %s1553_s4 = inlined_call_operand.vmem [shape: f32[4,256], index: 4, kind: input, shape index: {}]   ;;  %s1554_s5 = inlined_call_operand.vmem [shape: f32[2,1,128], index: 5, kind: input, shape index: {}]   ;;  %s1555_s6 = inlined_call_operand.hbm [shape: f32[32,128], index: 6, kind: output, shape index: {}]  }
   0x1   :  { %1561 = sst [smem:[#allocation12_spill]] %s1549_s0 }
   0x2   :  { %11 = vsyncpa [#allocation4], 0 }
   0x3   :  { %13 = vsyncpa [#allocation4 + $0x1], 0  ;;  %s1283_s21 = smov 0   ;;  %s1285_s22 = smov 0  }
   0x4   :  { %s1287_s23 = smov 0   ;;  %s1289_s24 = smov 0  }
   0x5   :  { %s1291_s25 = smov 0   ;;  %s1293_s26 = smov 0  }
   0x6   :  { %s1295_s27 = smov 0   ;;  %s1297_s28 = smov 0  }
   0x7 LB: > { %1562 = sst [smem:[#allocation6_spill]] %s1222_s23  ;;  %s855_s29 = sadd.s32 4294967295, %s1242_s28   ;;  %s1242_s28 = sphi %s1297_s28, %s19_s28   ;;  %s1238_s27 = sphi %s1295_s27, %s1577_s27   ;;  %s1234_s26 = sphi %s1293_s26, %s1576_s26   ;;  %s1230_s25 = sphi %s1291_s25, %s1575_s25   ;;  %s1226_s24 = sphi %s1289_s24, %s1574_s24   ;;  %s1222_s23 = sphi %s1287_s23, %s1573_s23   ;;  %s1218_s22 = sphi %s1285_s22, %s1579_s22   ;;  %s1214_s21 = sphi %s1283_s21, %s1578_s21  }
   0x8   : > { %1563 = sst [smem:[#allocation7_spill]] %s1234_s26  ;;  %s856_s30 = sadd.s32 4294967294, %s1242_s28  }
   0x9   : > { %1564 = sst [smem:[#allocation8_spill]] %s1238_s27  ;;  %s28_s7 = sadd.s32 1, %s1234_s26 }
   0xa   : > { %p29_p0 = scmp.ge.s32.totalorder %s28_s7, 2  ;;  %s31_s8 = sadd.s32 1, %s1238_s27 }
   0xb   : > { %p199_p1 = scmp.ne.s32.totalorder %s1222_s23, %s1218_s22  ;;  %p200_p2 = scmp.eq.s32.totalorder %s855_s29, 7 }
   0xc   : > { %s1581_s7 = smov (%p29_p0, %s28_s7), 0  ;;  %s1583_s8 = smov (!%p29_p0, %s31_s8), %s1238_s27 }
   0xd   : > { %1565 = sst [smem:[#allocation9_spill]] %s1581_s7  ;;  %p1332_p3 = por %p200_p2, %p199_p1 }
   0xe   : > { %p205_p4 = scmp.ne.s32.totalorder %s1218_s22, %s1214_s21  ;;  %p33_p5 = scmp.ge.s32.totalorder %s1583_s8, 4 }
   0xf   : > { %p206_p6 = scmp.eq.s32.totalorder %s856_s30, 7  ;;  %p859_p7 = scmp.ge.s32.totalorder %s1242_s28, 1 }
  0x10   : > { %p264_p8 = scmp.lt.s32.totalorder %s1242_s28, 9  ;;  %s1585_s8 = smov (%p33_p5, %s1583_s8), 0 }
  0x11   : > { %1567 = sst [smem:[#allocation10_spill]] %s1585_s8  ;;  %p1342_p9 = por %p206_p6, %p205_p4 }
  0x12   : > { %p265_p10 = pnand %p859_p7, %p264_p8  ;;  %s186_s11 = ssub.s32 %s1238_s27, %s1585_s8 }
  0x13   : > { %s189_s12 = sadd.s32 1, %s1222_s23  ;;  %p187_p11 = scmp.eq.s32.totalorder %s186_s11, 0 }
  0x14   : > { %268 = sbr.rel (%p265_p10) target bundleno = 945 (0x3b1), region = 44  ;;  %s1556_s14 = sand.u32 (!%p265_p10), 1, %s1218_s22  }
  0x15   : > { %s1350_s13 = scalar_select %p187_p11, %s1222_s23, %s189_s12  }
  0x16   : > { %p311_p12 = scmp.lt.s32.totalorder (!%p265_p10), %s1230_s25, 3  ;;  %s1356_s15 = sshll.u32 (!%p265_p10), %s1556_s14, 3 }
  0x17   : > { %1569 = sst [smem:[#allocation11_spill]] %s1350_s13  ;;  %p315_p13 = scmp.lt.s32.totalorder (!%p265_p10), %s1226_s24, 1 }
  0x18   : > { %s1570_s0 = sld [smem:[#allocation12_spill]] (!%p265_p10)  ;;  %p868_p0 = scmp.ne.s32.totalorder (!%p265_p10), %s1226_s24, 0 }
  0x1b   : > { %s312_s16 = scalar_select %p311_p12, %s1230_s25, 3 }
  0x1c   : > { %s1361_s17 = scalar_select %p315_p13, %s1226_s24, 1 }
  0x1d   : > { %s861_s18 = sshll.u32 %s312_s16, 3  ;;  %336 = sbr.rel (%p868_p0) target bundleno = 36 (0x24), region = 48 }
  0x1e   : > { %s1366_s29 = scalar_lea.vmem %s1570_s0, %s861_s18  ;;  %s878_s30 = sshll.u32 %s1361_s17, 8 }
  0x1f   : > { %s1372_s14 = scalar_lea.vmem %s1550_s1, %s878_s30  ;;  %s879_s8 = sshll.u32 %s1361_s17, 7  ;;  %v337_v0 = vld [vmem:[%s1366_s29] sm:$0xff] (!%p868_p0) }
  0x20   : > { %s1378_s26 = scalar_lea.vmem %s1551_s2, %s879_s8  ;;  %s1383_s16 = scalar_lea.vmem %s1552_s3, %s879_s8  ;;  %338 = vst [vmem:[#allocation2] sm:$0xff] (!%p868_p0), %v337_v0 }
  0x21   : > { %s332_s20 = scalar_lea.vmem %s1554_s5, %s1361_s17  ;;  %s310_s0 = scalar_lea.vmem [#allocation3], %s1356_s15 }
  0x24 PF: > { %v341_v1 = vld [vmem:[%s1372_s14 + $0x8] sm:$0xff]  ;;  %v343_v2 = vld [vmem:[%s1372_s14 + $0x18] sm:$0xff]  ;;  %v340_v3 = vld [vmem:[%s1372_s14] sm:$0xff]  ;;  %v1244_v8 = vmov 0.0   ;;  %vm443_vm0 = vcmask 31744   ;;  %vm456_vm1 = vcmask 1043456  }
  0x25   : > { %v985_v4 = vpack.c.bf16 %v343_v2, %v341_v1  ;;  %v342_v5 = vld [vmem:[%s1372_s14 + $0x10] sm:$0xff]  ;;  %v345_v6 = vld [vmem:[%s1372_s14 + $0x28] sm:$0xff]  ;;  %v347_v7 = vld [vmem:[%s1372_s14 + $0x38] sm:$0xff]  ;;  %436 = vmatprep.mubr.f32.mxu0 %v1244_v8  ;;  %525 = vmatprep.mubr.f32.mxu1 %v1244_v8  ;;  %v1245_v56 = vmov 0.0|0.0   ;;  %vm1246_vm2 = vmmov 0   ;;  %p873_p1 = scmp.ne.s32.totalorder %s1226_s24, 1 }
  0x26   : > { %v987_v9 = vpack.c.bf16 %v342_v5, %v340_v3  ;;  %v989_v10 = vpack.c.bf16 %v347_v7, %v345_v6  ;;  %v344_v11 = vld [vmem:[%s1372_s14 + $0x20] sm:$0xff]  ;;  %v346_v12 = vld [vmem:[%s1372_s14 + $0x30] sm:$0xff]  ;;  %v349_v13 = vld [vmem:[%s1372_s14 + $0x48] sm:$0xff] }
  0x27   : > { %986 = vmatprep.subr.bf16.mxu0 %v985_v4  ;;  %v351_v14 = vld [vmem:[%s1372_s14 + $0x58] sm:$0xff]  ;;  %v991_v15 = vpack.c.bf16 %v346_v12, %v344_v11  ;;  %v348_v17 = vld [vmem:[%s1372_s14 + $0x40] sm:$0xff]  ;;  %v350_v18 = vld [vmem:[%s1372_s14 + $0x50] sm:$0xff] }
  0x28   : > { %988 = vmatpush1.bf16.msra.mxu0 %v987_v9  ;;  %v993_v16 = vpack.c.bf16 %v351_v14, %v349_v13  ;;  %v353_v19 = vld [vmem:[%s1372_s14 + $0x68] sm:$0xff]  ;;  %v355_v20 = vld [vmem:[%s1372_s14 + $0x78] sm:$0xff]  ;;  %v995_v21 = vpack.c.bf16 %v350_v18, %v348_v17  ;;  %v352_v23 = vld [vmem:[%s1372_s14 + $0x60] sm:$0xff] }
  0x29   : > { %990 = vmatprep.subr.bf16.mxu0 %v989_v10  ;;  %v997_v22 = vpack.c.bf16 %v355_v20, %v353_v19  ;;  %v354_v24 = vld [vmem:[%s1372_s14 + $0x70] sm:$0xff]  ;;  %v357_v25 = vld [vmem:[%s1372_s14 + $0x88] sm:$0xff]  ;;  %v359_v26 = vld [vmem:[%s1372_s14 + $0x98] sm:$0xff] }
  0x2a   : > { %v999_v27 = vpack.c.bf16 %v354_v24, %v352_v23  ;;  %v1001_v28 = vpack.c.bf16 %v359_v26, %v357_v25  ;;  %v356_v29 = vld [vmem:[%s1372_s14 + $0x80] sm:$0xff]  ;;  %v358_v30 = vld [vmem:[%s1372_s14 + $0x90] sm:$0xff]  ;;  %v361_v31 = vld [vmem:[%s1372_s14 + $0xa8] sm:$0xff] }
  0x2b   : > { %v363_v32 = vld [vmem:[%s1372_s14 + $0xb8] sm:$0xff]  ;;  %v1003_v33 = vpack.c.bf16 %v358_v30, %v356_v29  ;;  %v360_v35 = vld [vmem:[%s1372_s14 + $0xa0] sm:$0xff]  ;;  %v362_v36 = vld [vmem:[%s1372_s14 + $0xb0] sm:$0xff] }
  0x2c   : > { %992 = vmatpush1.bf16.msra.mxu0 %v991_v15  ;;  %v1005_v34 = vpack.c.bf16 %v363_v32, %v361_v31  ;;  %v365_v37 = vld [vmem:[%s1372_s14 + $0xc8] sm:$0xff]  ;;  %v367_v38 = vld [vmem:[%s1372_s14 + $0xd8] sm:$0xff]  ;;  %v1007_v39 = vpack.c.bf16 %v362_v36, %v360_v35  ;;  %v364_v41 = vld [vmem:[%s1372_s14 + $0xc0] sm:$0xff] }
  0x2d   : > { %994 = vmatprep.subr.bf16.mxu0 %v993_v16  ;;  %v1009_v40 = vpack.c.bf16 %v367_v38, %v365_v37  ;;  %v366_v42 = vld [vmem:[%s1372_s14 + $0xd0] sm:$0xff]  ;;  %v369_v43 = vld [vmem:[%s1372_s14 + $0xe8] sm:$0xff]  ;;  %v371_v44 = vld [vmem:[%s1372_s14 + $0xf8] sm:$0xff] }
  0x2e   : > { %v1011_v45 = vpack.c.bf16 %v366_v42, %v364_v41  ;;  %v1013_v46 = vpack.c.bf16 %v371_v44, %v369_v43  ;;  %v368_v47 = vld [vmem:[%s1372_s14 + $0xe0] sm:$0xff]  ;;  %v370_v48 = vld [vmem:[%s1372_s14 + $0xf0] sm:$0xff]  ;;  %v536_v61 = vld [vmem:[%s1378_s26 + $0x8] sm:$0xff] }
  0x2f   : > { %v1015_v49 = vpack.c.bf16 %v370_v48, %v368_v47  ;;  %v1426_v50 = vld [vmem:[#allocation2] sm:$0xff]  ;;  %v537_v63 = vld [vmem:[%s1378_s26 + $0x10] sm:$0xff]  ;;  %v538_v0 = vld [vmem:[%s1378_s26 + $0x18] sm:$0xff] }
  0x30   : > { %996 = vmatpush1.bf16.msra.mxu0 %v995_v21  ;;  %v450_v54 = vld [vmem:[%s1553_s4] sm:$0xff]  ;;  %v1021_v2 = vpack.c.bf16 %v538_v0, %v537_v63  ;;  %v540_v4 = vld [vmem:[%s1378_s26 + $0x28] sm:$0xff]  ;;  %v541_v6 = vld [vmem:[%s1378_s26 + $0x30] sm:$0xff] }
  0x31   : > { %998 = vmatprep.subr.bf16.mxu0 %v997_v22  ;;  %v452_v55 = vcombine.high %v450_v54, %v450_v54  ;;  %v535_v60 = vld [vmem:[%s1378_s26] sm:$0xff]  ;;  %v542_v7 = vld [vmem:[%s1378_s26 + $0x38] sm:$0xff]  ;;  %v545_v12 = vld [vmem:[%s1378_s26 + $0x50] sm:$0xff] }
  0x32   : > { %v1018_v62 = vpack.c.bf16 %v536_v61, %v535_v60  ;;  %v539_v3 = vld [vmem:[%s1378_s26 + $0x20] sm:$0xff]  ;;  %v1027_v9 = vpack.c.bf16 %v542_v7, %v541_v6  ;;  %v546_v13 = vld [vmem:[%s1378_s26 + $0x58] sm:$0xff]  ;;  %v548_v16 = vld [vmem:[%s1378_s26 + $0x68] sm:$0xff] }
  0x33   : > { %869 = vmatprep.subr.msk.mxu1 %vm456_vm1, %v452_v55  ;;  %v1024_v5 = vpack.c.bf16 %v540_v4, %v539_v3  ;;  %v543_v10 = vld [vmem:[%s1378_s26 + $0x40] sm:$0xff]  ;;  %v1033_v14 = vpack.c.bf16 %v546_v13, %v545_v12  ;;  %v549_v18 = vld [vmem:[%s1378_s26 + $0x70] sm:$0xff]  ;;  %v550_v19 = vld [vmem:[%s1378_s26 + $0x78] sm:$0xff] }
  0x34   : > { %1000 = vmatpush1.bf16.msra.mxu0 %v999_v27  ;;  %870 = vmatpush1.msk.msra.mxu1 %vm456_vm1, %v450_v54  ;;  %v547_v15 = vld [vmem:[%s1378_s26 + $0x60] sm:$0xff]  ;;  %v1039_v20 = vpack.c.bf16 %v550_v19, %v549_v18  ;;  %v624_v23 = vld [vmem:[%s1383_s16 + $0x8] sm:$0xff]  ;;  %v625_v24 = vld [vmem:[%s1383_s16 + $0x10] sm:$0xff] }
  0x35   : > { %1002 = vmatprep.subr.bf16.mxu0 %v1001_v28  ;;  %1017 = vmatprep.subr.bf16.mxu1 %v1245_v56  ;;  %v1036_v17 = vpack.c.bf16 %v548_v16, %v547_v15  ;;  %v623_v22 = vld [vmem:[%s1383_s16] sm:$0xff]  ;;  %v626_v26 = vld [vmem:[%s1383_s16 + $0x18] sm:$0xff]  ;;  %v628_v29 = vld [vmem:[%s1383_s16 + $0x28] sm:$0xff] }
  0x36   : > { %v1042_v25 = vpack.c.bf16 %v624_v23, %v623_v22  ;;  %v1045_v27 = vpack.c.bf16 %v626_v26, %v625_v24  ;;  %v627_v28 = vld [vmem:[%s1383_s16 + $0x20] sm:$0xff]  ;;  %v629_v31 = vld [vmem:[%s1383_s16 + $0x30] sm:$0xff]  ;;  %v630_v32 = vld [vmem:[%s1383_s16 + $0x38] sm:$0xff] }
  0x37   : > { %v1048_v30 = vpack.c.bf16 %v628_v29, %v627_v28  ;;  %v632_v35 = vld [vmem:[%s1383_s16 + $0x48] sm:$0xff]  ;;  %v633_v37 = vld [vmem:[%s1383_s16 + $0x50] sm:$0xff]  ;;  %v634_v38 = vld [vmem:[%s1383_s16 + $0x58] sm:$0xff] }
  0x38   : > { %1004 = vmatpush1.bf16.msra.mxu0 %v1003_v33  ;;  %v1051_v33 = vpack.c.bf16 %v630_v32, %v629_v31  ;;  %v636_v41 = vld [vmem:[%s1383_s16 + $0x68] sm:$0xff]  ;;  %v637_v43 = vld [vmem:[%s1383_s16 + $0x70] sm:$0xff]  ;;  %v638_v44 = vld [vmem:[%s1383_s16 + $0x78] sm:$0xff] }
  0x39   : > { %1006 = vmatprep.subr.bf16.mxu0 %v1005_v34  ;;  %v631_v34 = vld [vmem:[%s1383_s16 + $0x40] sm:$0xff] }
  0x3a   : > { %v1054_v36 = vpack.c.bf16 %v632_v35, %v631_v34  ;;  %v872_v55 = vld [vmem:[%s332_s20] ss:$0 sm:$0xff] }
  0x3c   : > { %1008 = vmatpush1.bf16.msra.mxu0 %v1007_v39  ;;  %v1057_v39 = vpack.c.bf16 %v634_v38, %v633_v37 }
  0x3d   : > { %1010 = vmatprep.subr.bf16.mxu0 %v1009_v40  ;;  %v635_v40 = vld [vmem:[%s1383_s16 + $0x60] sm:$0xff] }
  0x3e   : > { %v1060_v42 = vpack.c.bf16 %v636_v41, %v635_v40 }
  0x40   : > { %1012 = vmatpush1.bf16.msra.mxu0 %v1011_v45  ;;  %v1063_v45 = vpack.c.bf16 %v638_v44, %v637_v43 }
  0x41   : > { %1014 = vmatprep.subr.bf16.mxu0 %v1013_v46 }
  0x44   : > { %1016 = vmatpush1.bf16.msra.mxu0 %v1015_v49 }
  0x45   : > { %1041 = vmatprep.subr.bf16.mxu0 %v1245_v56 }
  0x47   : > { %437 = vmatmul.mubr.f32.vlgmr.msra.gmra.mrb[0].mxu0 %v1426_v50 }
  0x48   : > { %982 = vmatprep.mubr.msk.f32.mxu0 %vm1246_vm2, %v1244_v8  ;;  %1043 = vmatpush3.bf16.msra.mxu0 %v1042_v25 }
  0x49   : > { %1044 = vmatprep.subr.bf16.mxu0 %v1245_v56 }
  0x4c   : > { %1046 = vmatpush3.bf16.msra.mxu0 %v1045_v27 }
  0x4d   : > { %1047 = vmatprep.subr.bf16.mxu0 %v1245_v56 }
  0x50   : > { %1049 = vmatpush3.bf16.msra.mxu0 %v1048_v30 }
  0x51   : > { %1050 = vmatprep.subr.bf16.mxu0 %v1245_v56 }
  0x54   : > { %1052 = vmatpush3.bf16.msra.mxu0 %v1051_v33 }
  0x55   : > { %1053 = vmatprep.subr.bf16.mxu0 %v1245_v56 }
  0x58   : > { %1055 = vmatpush3.bf16.msra.mxu0 %v1054_v36 }
  0x59   : > { %1056 = vmatprep.subr.bf16.mxu0 %v1245_v56 }
  0x5c   : > { %1058 = vmatpush3.bf16.msra.mxu0 %v1057_v39 }
  0x5d   : > { %1059 = vmatprep.subr.bf16.mxu0 %v1245_v56 }
  0x60   : > { %1061 = vmatpush3.bf16.msra.mxu0 %v1060_v42 }
  0x61   : > { %1062 = vmatprep.subr.bf16.mxu0 %v1245_v56 }
  0x64   : > { %1064 = vmatpush3.bf16.msra.mxu0 %v1063_v45 }
 0x11a   : > { %v438_v51 = vpop.f32.mrb[0].mxu0 }
 0x11b   : > { %v440_v52 = vpop.f32.mrb[1].mxu0 }
 0x11c   : > { %v444_v53 = vsel %vm443_vm0, %v440_v52, -inf }
 0x11d   : > { %445 = vmax.xlane.f32.xlu0 %v444_v53 }
 0x1aa   : > { %v446_v57 = vpop.xlane.xlu0 %445 }
 0x1ab   : > { %v447_v58 = vsub.f32 %v440_v52, %v446_v57  ;;  %v639_v57 = vld [vmem:[%s1366_s29] sm:$0xff] }
 0x1ad   : > { %v448_v59 = vmul.f32 1.442695, %v447_v58 }
 0x1af   : > { %1140 = vpow2.f32 %v448_v59 }
 0x1b0   : > { %1142 = vtanh.f32 %v438_v51 }
 0x1b9   : > { %v1141_v1 = vpop.eup %1140 }
 0x1ba   : > { %871 = vmatmul.mubr.msk.f32.vlgmr.msra.gmra.mrb[0].mxu1 %vm443_vm0, %v1141_v1  ;;  %v1143_v21 = vpop.eup %1142 }
 0x1bb   : > { %1019 = vmatpush3.bf16.msra.mxu1 %v1018_v62  ;;  %947 = vmatprep.mubr.msk.f32.mxu1 %vm1246_vm2, %v1244_v8  ;;  %v544_v8 = vld [vmem:[%s1378_s26 + $0x48] sm:$0xff] }
 0x1bc   : > { %1020 = vmatprep.subr.bf16.mxu1 %v1245_v56  ;;  %v1030_v11 = vpack.c.bf16 %v544_v8, %v543_v10 }
 0x1bf   : > { %1022 = vmatpush3.bf16.msra.mxu1 %v1021_v2 }
 0x1c0   : > { %1023 = vmatprep.subr.bf16.mxu1 %v1245_v56 }
 0x1c3   : > { %1025 = vmatpush3.bf16.msra.mxu1 %v1024_v5 }
 0x1c4   : > { %1026 = vmatprep.subr.bf16.mxu1 %v1245_v56 }
 0x1c7   : > { %1028 = vmatpush3.bf16.msra.mxu1 %v1027_v9 }
 0x1c8   : > { %1029 = vmatprep.subr.bf16.mxu1 %v1245_v56 }
 0x1cb   : > { %1031 = vmatpush3.bf16.msra.mxu1 %v1030_v11 }
 0x1cc   : > { %1032 = vmatprep.subr.bf16.mxu1 %v1245_v56 }
 0x1cf   : > { %1034 = vmatpush3.bf16.msra.mxu1 %v1033_v14 }
 0x1d0   : > { %1035 = vmatprep.subr.bf16.mxu1 %v1245_v56 }
 0x1d3   : > { %1037 = vmatpush3.bf16.msra.mxu1 %v1036_v17 }
 0x1d4   : > { %1038 = vmatprep.subr.bf16.mxu1 %v1245_v56 }
 0x1d7   : > { %1040 = vmatpush3.bf16.msra.mxu1 %v1039_v20 }
 0x1da   : > { %948 = vmatmul.mubr.f32.vlgmr.msra.gmra.mrb[2].mxu1 %v1143_v21 }
 0x28d   : > { %v527_v46 = vpop.f32.mrb[0].mxu1 }
 0x28e   : > { %v529_v47 = vpop.f32.mrb[1].mxu1 }
 0x28f   : > { %1144 = vrcp.f32 %v529_v47 }
 0x299   : > { %v1145_v48 = vpop.eup %1144 }
 0x29a   : > { %v533_v49 = vmul.f32 %v1145_v48, %v527_v46 }
 0x2ad   : > { %v617_v51 = vpop.f32.mrb[2].mxu1 }
 0x2ae   : > { %1146 = vtanh.f32 %v617_v51  ;;  %v949_v52 = vpop.f32.mrb[3].mxu1 }
 0x2b8   : > { %v1147_v53 = vpop.eup %1146 }
 0x2b9   : > { %v622_v54 = vmul.f32 %v1147_v53, %v533_v49 }
 0x2bb   : > { %983 = vmatmul.mubr.f32.vlgmr.msra.gmra.mrb[2].mxu0 %v622_v54 }
 0x38e   : > { %v713_v58 = vpop.f32.mrb[2].mxu0 }
 0x38f   : > { %v714_v56 = vadd.f32 %v872_v55, %v713_v58  ;;  %v984_v59 = vpop.f32.mrb[3].mxu0 }
 0x391   : > { %v717_v60 = vmul.f32 %v714_v56, %v639_v57  ;;  %724 = sbr.rel (%p873_p1) target bundleno = 920 (0x398), region = 52 }
 0x393   : > { %v718_v61 = vadd.f32 %v717_v60, %v1426_v50 }
 0x395   : > { %v719_v62 = vadd.f32 %v718_v61, %v639_v57 }
 0x397   : > { %720 = vst [vmem:[#allocation2] sm:$0xff] %v719_v62  ;;  %725 = vst [vmem:[%s310_s0] sm:$0xff] (!%p873_p1), %v719_v62 }
 0x398 PF: > { %s875_s8 = sshll.u32 %s1230_s25, 7  ;;  %s740_s29 = sshll.u32 %s310_s0, 4  ;;  %s741_s29 = int_to_ptr.vmem [resolvable:$true] %s740_s29 }
 0x399   : > { %s1498_s17 = scalar_lea.hbm %s1555_s6, %s875_s8  ;;  %s1571_s30 = sand.u32 1, %s1218_s22  }
 0x39a   : > { %s727_s24 = scalar_lea.sflag [#allocation4], %s1571_s30  ;;  %s1148_s11 = scalar_lea.vmem %s741_s29, 128 }
 0x39b   : > { %p1149_p2 = scmp.ne.s32.totalorder %s741_s29, %s1148_s11  ;;  %s1247_s12 = smov [#allocation3]  }
 0x39c   : > { %s1152_s16 = sshll.u32 %s1247_s12, 4  ;;  %s1153_s16 = int_to_ptr.vmem [resolvable:$false] %s1152_s16 }
 0x39d   : > { %p1150_p4 = pnand %p1149_p2, %p1332_p3  ;;  %s1154_s19 = scalar_lea.vmem %s1153_s16, 256 }
 0x39e   : > { %p1155_p6 = scmp.lt.s32.totalorder %s741_s29, %s1153_s16  ;;  %p1156_p7 = scmp.lt.s32.totalorder %s1154_s19, %s1148_s11 }
 0x39f   : > { %p1151_p5 = pneg %p1150_p4 }
 0x3a0   : > { %p1157_p8 = por %p1156_p7, %p1155_p6 }
 0x3a2   : > { %p1158_p10 = pnand %p1157_p8, %p1151_p5 }
 0x3a4   : > { %1161 = shalt.err (!%p1158_p10)
}
 0x3a5   : > { %s1162_s0 = scalar_lea.hbm %s1498_s17, 128  ;;  %s1166_s18 = scalar_lea.hbm %s1555_s6, 512 }
 0x3a6   : > { %p1163_p11 = scmp.ne.s32.totalorder %s1498_s17, %s1162_s0  ;;  %p1167_p0 = scmp.lt.u32.totalorder %s1498_s17, %s1555_s6 }
 0x3a7   : > { %p1168_p1 = scmp.lt.u32.totalorder %s1166_s18, %s1162_s0  ;;  %p1170_p4 = scmp.lt.u32.totalorder %s1162_s0, %s1498_s17 }
 0x3a8   : > { %p1164_p12 = pnand %p1163_p11, %p1332_p3 }
 0x3a9   : > { %p1169_p2 = por %p1168_p1, %p1167_p0 }
 0x3aa   : > { %p1165_p13 = pneg %p1164_p12 }
 0x3ab   : > { %p1171_p5 = por %p1170_p4, %p1169_p2 }
 0x3ad   : > { %p1172_p6 = pnand %p1171_p5, %p1165_p13 }
 0x3af   : > { %1175 = shalt.err (!%p1172_p6)
}
 0x3b0   : > { %1065 = dma.vmem_to_hbm [thread:$0]  (%p1332_p3), %s741_s29, 128, %s1498_s17, %s727_s24  }
 0x3b1 PF: > { %p1071_p7 = scmp.ge.s32.totalorder %s1242_s28, 2  ;;  %s752_s27 = sand.u32 1, %s1214_s21  }
 0x3b2   : > { %s753_s26 = scalar_lea.sflag [#allocation4], %s752_s27 }
 0x3b3   : > { %p1068_p8 = pnand %p1071_p7, %p1342_p9 }
 0x3b5   : > { %1209 = dma.done.wait (!%p1068_p8), %s753_s26, 128  }
 0x3b6   : > { %1211 = vsyncadd (!%p1068_p8), %s753_s26, 4294967168  ;;  %s19_s28 = sadd.s32 1, %s1242_s28   ;;  %s1572_s7 = sld [smem:[#allocation6_spill]] }
 0x3b7   : > { %p16_p10 = scmp.ge.s32.totalorder %s19_s28, 10   ;;  %s1573_s23 = sld [smem:[#allocation11_spill]] }
 0x3b8   : > { %s1574_s24 = sld [smem:[#allocation7_spill]]  ;;  %s1575_s25 = sld [smem:[#allocation8_spill]] }
 0x3b9   : > { %s1576_s26 = sld [smem:[#allocation9_spill]]  ;;  %s1577_s27 = sld [smem:[#allocation10_spill]] }
 0x3ba   : > { %s1578_s21 = smov %s1218_s22  ;;  %18 = sbr.rel (!%p16_p10) target bundleno = 7 (0x7), region = 99 }
 0x3bc   : > { %s1579_s22 = smov %s1572_s7 }
 0x3c1   :  { %758 = vsyncpa [#allocation4], 1 }
 0x3c2   :  { %760 = vsyncpa [#allocation4 + $0x1], 1 }

</bundles_post_ra>
